<compile_context>
chip_gen: v7x
topology: tpu7x:2x2x1
jax: 0.10.0
libtpu: 0.0.40
codegen_flags: <defaults>
</compile_context>

<pallas_src>
import functools

import jax
import jax.numpy as jnp
from jax.experimental import pallas as pl
from jax.experimental.pallas import tpu as pltpu

HID = 64                 # true hidden width of fc1 / fc2
HP = 128                 # lane-padded hidden width == output slab width
HALF = 64                # actor copy in lanes [0, 64), critic copy in lanes [64, 128)
K1 = 8                   # sublane-padded input width (input_size padded to 8)
NEG_INF = -1e30          # pre-baked mask for padded actor lanes (exp -> 0)
SUBLANE_ROUND = 16       # batch-tile rounding (safe for f32 and bf16 output tiles)

# Packed parameter buffer layout ((8,128)-aligned blocks), built once offline:
W1_OFF = 0               # rows [0, 8):    W1 padded        [8, 128]
B_OFF = K1               # rows [8, 16):   bias block       [8, 128]  (row0=b1, row1=b2, row2=b3 dual)
W2_OFF = B_OFF + 8       # rows [16, 144): W2 padded        [128, 128]
W3_OFF = W2_OFF + HP     # rows [144,272): W3 duplicated    [128, 128] (actor cols | critic cols)
W_ROWS = W3_OFF + HP     # 272 rows total  (272*128*4 B ~= 136 KiB, VMEM-resident)


def _actor_critic_kernel(x_ref, w_ref, out_ref, *, mxu_dtype):
    """x_ref: [TB, K1] f32; w_ref: [272, 128] f32 packed params; out_ref: [TB, 128]."""
    x = x_ref[...]                                            # [TB, 8]
    w1 = w_ref[W1_OFF:W1_OFF + K1, :]                         # [8, 128]
    bias_block = w_ref[B_OFF:B_OFF + 8, :]                    # [8, 128] (aligned load)
    b1 = bias_block[0:1, :]                                   # [1, 128]
    b2 = bias_block[1:2, :]
    b3 = bias_block[2:3, :]                                   # actor copy | NEG_INF pad | critic copy | 0
    w2 = w_ref[W2_OFF:W2_OFF + HP, :]                         # [128, 128]
    w3 = w_ref[W3_OFF:W3_OFF + HP, :]                         # [128, 128] duplicated actor|critic cols

    # fc1 / fc2: MXU matmuls with f32 accumulation; bias adds and ReLU are free
    # VPU broadcasts. mxu_dtype=bf16 is the gated v5e fast path (astype is a
    # no-op for the default f32 path).
    h1 = jnp.maximum(
        jnp.dot(x.astype(mxu_dtype), w1.astype(mxu_dtype),
                preferred_element_type=jnp.float32) + b1, 0.0)
    h2 = jnp.maximum(
        jnp.dot(h1.astype(mxu_dtype), w2.astype(mxu_dtype),
                preferred_element_type=jnp.float32) + b2, 0.0)
    # fc3: W3/b3 are duplicated, so lanes [0,64) and [64,128) both hold logits.
    logits = jnp.dot(h2.astype(mxu_dtype), w3.astype(mxu_dtype),
                     preferred_element_type=jnp.float32) + b3       # [TB, 128]

    # Numerically stable softmax over the actor half only. Critic lanes are
    # masked to NEG_INF for max/sum; padded actor lanes already carry NEG_INF
    # from the packed b3 row, so exp underflows cleanly to 0.
    lane = jax.lax.broadcasted_iota(jnp.int32, logits.shape, 1)
    is_actor = lane < HALF
    masked = jnp.where(is_actor, logits, NEG_INF)
    m = jnp.max(masked, axis=-1, keepdims=True)
    e = jnp.exp(masked - m)
    denom = jnp.sum(e, axis=-1, keepdims=True)
    # EUP approx reciprocal (free slot) + one Newton step -> full f32 accuracy.
    r = pl.reciprocal(denom, approx=True)
    r = r * (2.0 - denom * r)
    actor = e * r

    # Single lane-dense, unmasked [TB, 128] store:  actor | critic.
    # (Critic padded lanes are exactly 0 here, not sentinel garbage.)
    out_ref[...] = jnp.where(is_actor, actor, logits).astype(out_ref.dtype)


def _round_up(n, m):
    return ((n + m - 1) // m) * m


def pack_params(params, input_size, output_size):
    """Pack W1/b1/W2/b2/W3/b3 into one (8,128)-aligned [272,128] f32 buffer (done once)."""
    assert input_size <= K1, "input_size too large for K1 padding"
    assert output_size <= HALF, "output_size must fit the actor half (<= 64)"
    w1, b1 = params["w1"], params["b1"]   # [in, 64], [1, 64]   (pre-transposed)
    w2, b2 = params["w2"], params["b2"]   # [64, 64], [1, 64]
    w3, b3 = params["w3"], params["b3"]   # [64, out], [1, out]

    wp = jnp.zeros((W_ROWS, HP), jnp.float32)
    # layer-1 weights
    wp = wp.at[W1_OFF:W1_OFF + input_size, :HID].set(w1.astype(jnp.float32))
    # bias block
    wp = wp.at[B_OFF + 0, :HID].set(b1[0].astype(jnp.float32))
    wp = wp.at[B_OFF + 1, :HID].set(b2[0].astype(jnp.float32))
    wp = wp.at[B_OFF + 2, :output_size].set(b3[0].astype(jnp.float32))        # actor copy
    wp = wp.at[B_OFF + 2, output_size:HALF].set(NEG_INF)                      # mask padded actor lanes
    wp = wp.at[B_OFF + 2, HALF:HALF + output_size].set(b3[0].astype(jnp.float32))  # critic copy
    # layer-2 weights
    wp = wp.at[W2_OFF:W2_OFF + HID, :HID].set(w2.astype(jnp.float32))
    # layer-3 weights, duplicated: actor columns [0, out), critic columns [64, 64+out)
    wp = wp.at[W3_OFF:W3_OFF + HID, :output_size].set(w3.astype(jnp.float32))
    wp = wp.at[W3_OFF:W3_OFF + HID, HALF:HALF + output_size].set(w3.astype(jnp.float32))
    return wp


@functools.partial(
    jax.jit,
    static_argnames=("output_size", "max_batch_tile", "mxu_dtype", "out_dtype"))
def actor_critic_forward(x, w_pack, *, output_size, max_batch_tile=2048,
                         mxu_dtype=jnp.float32, out_dtype=jnp.float32):
    """x: [B, input_size] f32, w_pack: [272, 128] f32 from pack_params."""
    B, in_size = x.shape
    assert in_size <= K1 and output_size <= HALF

    # --- batch tiling ---------------------------------------------------------
    max_tile = min(int(max_batch_tile), 4096)        # v7x: keep f32 temps inside 64 MiB VMEM
    num_tiles = pl.cdiv(B, max_tile)
    if B >= 16:
        num_tiles = max(num_tiles, 2)                 # >= 2 grid steps -> both v7x TensorCores work
    TB = _round_up(pl.cdiv(B, num_tiles), SUBLANE_ROUND)   # balanced tiles, bounded padding waste
    B_pad = num_tiles * TB

    # Pad activations once (zero-pad only; no ones-column concat anymore).
    if B_pad != B or in_size != K1:
        x = jnp.pad(x.astype(jnp.float32), ((0, B_pad - B), (0, K1 - in_size)))
    else:
        x = x.astype(jnp.float32)

    # Explicit scoped-VMEM budget: double-buffered in/out tiles + resident
    # weights + ~8 f32 [TB,128] temporaries, with headroom; capped well below
    # v7x's 64 MiB physical VMEM.
    vmem_bytes = (2 * TB * K1 * 4 + 2 * TB * HP * 4 + 2 * W_ROWS * HP * 4
                  + 8 * TB * HP * 4)
    vmem_limit = int(min(max(2 * vmem_bytes, 32 << 20), 48 << 20))

    kernel = functools.partial(_actor_critic_kernel, mxu_dtype=mxu_dtype)
    out = pl.pallas_call(
        kernel,
        out_shape=jax.ShapeDtypeStruct((B_pad, HP), out_dtype),
        grid=(num_tiles,),
        in_specs=[
            pl.BlockSpec((TB, K1), lambda i: (i, 0)),        # activations stream
            pl.BlockSpec((W_ROWS, HP), lambda i: (0, 0)),    # packed params stay VMEM-resident
        ],
        out_specs=pl.BlockSpec((TB, HP), lambda i: (i, 0)),  # single lane-dense actor|critic slab
        compiler_params=pltpu.CompilerParams(
            dimension_semantics=("parallel",),               # shard batch across TCs (v7x)
            vmem_limit_bytes=vmem_limit),
    )(x, w_pack)

    actor = out[:B, :output_size]
    critic = out[:B, HALF:HALF + output_size]
    return actor, critic


def init_params(key, input_size, output_size, hidden=HID):
    """Deterministic init mimicking PyTorch nn.Linear default (U(-1/sqrt(fan_in), ..))."""
    def linear(k, fan_in, fan_out):
        kw, kb = jax.random.split(k)
        bound = 1.0 / jnp.sqrt(jnp.float32(fan_in))
        # stored pre-transposed: [fan_in, fan_out]
        w = jax.random.uniform(kw, (fan_in, fan_out), jnp.float32, -bound, bound)
        b = jax.random.uniform(kb, (1, fan_out), jnp.float32, -bound, bound)
        return w, b

    k1, k2, k3 = jax.random.split(key, 3)
    w1, b1 = linear(k1, input_size, hidden)
    w2, b2 = linear(k2, hidden, hidden)
    w3, b3 = linear(k3, hidden, output_size)
    return {"w1": w1, "b1": b1, "w2": w2, "b2": b2, "w3": w3, "b3": b3}


def reference_forward(x, params):
    """Pure-JAX reference for correctness checking."""
    h1 = jnp.maximum(x @ params["w1"] + params["b1"], 0.0)
    h2 = jnp.maximum(h1 @ params["w2"] + params["b2"], 0.0)
    logits = h2 @ params["w3"] + params["b3"]
    return jax.nn.softmax(logits, axis=-1), logits


if __name__ == "__main__":
    # input_size = np.ndim(observation) = 3 for connect_four_v3 (6x7x2 obs); output_size = 7
    INPUT_SIZE = 3
    OUTPUT_SIZE = 7

    key = jax.random.PRNGKey(0)
    kx, kp = jax.random.split(key)
    params = init_params(kp, INPUT_SIZE, OUTPUT_SIZE)
    w_pack = pack_params(params, INPUT_SIZE, OUTPUT_SIZE)   # packed once, offline

    # 1) small-batch f32 path (tight correctness check)
    x = jax.random.normal(kx, (8, INPUT_SIZE), jnp.float32)
    actor, critic = actor_critic_forward(x, w_pack, output_size=OUTPUT_SIZE)
    jax.block_until_ready((actor, critic))
    actor_ref, critic_ref = reference_forward(x, params)
    assert actor.shape == (8, OUTPUT_SIZE) and critic.shape == (8, OUTPUT_SIZE)
    assert jnp.allclose(actor, actor_ref, atol=1e-5, rtol=1e-5)
    assert jnp.allclose(critic, critic_ref, atol=1e-5, rtol=1e-5)
    assert jnp.allclose(jnp.sum(actor, axis=-1), 1.0, atol=1e-5)

    # 2) multi-tile f32 path (balanced tiles, 2-step "parallel" grid, batch padding)
    xb = jax.random.normal(jax.random.PRNGKey(1), (1000, INPUT_SIZE), jnp.float32)
    actor_b, critic_b = actor_critic_forward(xb, w_pack, output_size=OUTPUT_SIZE)
    jax.block_until_ready((actor_b, critic_b))
    actor_rb, critic_rb = reference_forward(xb, params)
    assert jnp.allclose(actor_b, actor_rb, atol=1e-5, rtol=1e-5)
    assert jnp.allclose(critic_b, critic_rb, atol=1e-5, rtol=1e-5)

    # 3) gated low-precision path (v5e: bf16 MXU operands; v6e: bf16 output slab)
    xl = jax.random.normal(jax.random.PRNGKey(2), (32, INPUT_SIZE), jnp.float32)
    actor_l, critic_l = actor_critic_forward(
        xl, w_pack, output_size=OUTPUT_SIZE,
        mxu_dtype=jnp.bfloat16, out_dtype=jnp.bfloat16)
    jax.block_until_ready((actor_l, critic_l))
    actor_rl, critic_rl = reference_forward(xl, params)
    assert jnp.allclose(actor_l.astype(jnp.float32), actor_rl, atol=5e-2, rtol=5e-2)
    assert jnp.allclose(critic_l.astype(jnp.float32), critic_rl, atol=5e-2, rtol=5e-2)

    print("KERNEL_OK")
</pallas_src>

<mosaic_0001>
module attributes {stable_mosaic.version = 11 : i64} {
  func.func @_actor_critic_kernel(%arg0: i32, %arg1: memref<16x8xf32, #tpu.memory_space<vmem>>, %arg2: memref<272x128xf32, #tpu.memory_space<vmem>>, %arg3: memref<16x128xf32, #tpu.memory_space<vmem>>) attributes {dimension_semantics = [#tpu.dimension_semantics<parallel>], iteration_bounds = array<i64: 1>, scalar_prefetch = 0 : i64, scratch_operands = 0 : i64, tpu.core_type = #tpu.core_type<tc>, window_params = [{transform_indices = @transform_0, window_bounds = array<i64: 16, 8>}, {pipeline_mode = #tpu.pipeline_mode<synchronous>, transform_indices = @transform_1, window_bounds = array<i64: 272, 128>}, {transform_indices = @transform_2, window_bounds = array<i64: 16, 128>}]} {
    %c0 = arith.constant 0 : index
    %c0_0 = arith.constant 0 : index
    %0 = vector.load %arg1[%c0, %c0_0] : memref<16x8xf32, #tpu.memory_space<vmem>>, vector<16x8xf32>
    %c0_1 = arith.constant 0 : index
    %c0_2 = arith.constant 0 : index
    %1 = vector.load %arg2[%c0_1, %c0_2] : memref<272x128xf32, #tpu.memory_space<vmem>>, vector<8x128xf32>
    %c8 = arith.constant 8 : index
    %c0_3 = arith.constant 0 : index
    %2 = vector.load %arg2[%c8, %c0_3] : memref<272x128xf32, #tpu.memory_space<vmem>>, vector<8x128xf32>
    %3 = vector.extract_strided_slice %2 {offsets = [0, 0], sizes = [1, 128], strides = [1, 1]} : vector<8x128xf32> to vector<1x128xf32>
    %4 = vector.extract_strided_slice %2 {offsets = [1, 0], sizes = [1, 128], strides = [1, 1]} : vector<8x128xf32> to vector<1x128xf32>
    %5 = vector.extract_strided_slice %2 {offsets = [2, 0], sizes = [1, 128], strides = [1, 1]} : vector<8x128xf32> to vector<1x128xf32>
    %c16 = arith.constant 16 : index
    %c0_4 = arith.constant 0 : index
    %6 = vector.load %arg2[%c16, %c0_4] : memref<272x128xf32, #tpu.memory_space<vmem>>, vector<128x128xf32>
    %c144 = arith.constant 144 : index
    %c0_5 = arith.constant 0 : index
    %7 = vector.load %arg2[%c144, %c0_5] : memref<272x128xf32, #tpu.memory_space<vmem>>, vector<128x128xf32>
    %cst = arith.constant dense<0.000000e+00> : vector<16x128xf32>
    %8 = tpu.matmul %0, %1, %cst {dimension_numbers = #tpu.dot_dimension_numbers<[1], [0], [0], [1], [0, 0, 1, 1], [], []>} : vector<16x8xf32>, vector<8x128xf32>, vector<16x128xf32> -> vector<16x128xf32>
    %9 = vector.broadcast %3 : vector<1x128xf32> to vector<16x128xf32>
    %10 = arith.addf %8, %9 : vector<16x128xf32>
    %cst_6 = arith.constant 0.000000e+00 : f32
    %11 = vector.broadcast %cst_6 : f32 to vector<16x128xf32>
    %12 = arith.maximumf %10, %11 : vector<16x128xf32>
    %cst_7 = arith.constant dense<0.000000e+00> : vector<16x128xf32>
    %13 = tpu.matmul %12, %6, %cst_7 {dimension_numbers = #tpu.dot_dimension_numbers<[1], [0], [0], [1], [0, 0, 1, 1], [], []>} : vector<16x128xf32>, vector<128x128xf32>, vector<16x128xf32> -> vector<16x128xf32>
    %14 = vector.broadcast %4 : vector<1x128xf32> to vector<16x128xf32>
    %15 = arith.addf %13, %14 : vector<16x128xf32>
    %cst_8 = arith.constant 0.000000e+00 : f32
    %16 = vector.broadcast %cst_8 : f32 to vector<16x128xf32>
    %17 = arith.maximumf %15, %16 : vector<16x128xf32>
    %cst_9 = arith.constant dense<0.000000e+00> : vector<16x128xf32>
    %18 = tpu.matmul %17, %7, %cst_9 {dimension_numbers = #tpu.dot_dimension_numbers<[1], [0], [0], [1], [0, 0, 1, 1], [], []>} : vector<16x128xf32>, vector<128x128xf32>, vector<16x128xf32> -> vector<16x128xf32>
    %19 = vector.broadcast %5 : vector<1x128xf32> to vector<16x128xf32>
    %20 = arith.addf %18, %19 : vector<16x128xf32>
    %21 = tpu.iota {dimensions = array<i32: 1>} : vector<16x128xi32>
    %c64_i32 = arith.constant 64 : i32
    %22 = vector.broadcast %c64_i32 : i32 to vector<16x128xi32>
    %23 = arith.cmpi slt, %21, %22 : vector<16x128xi32>
    %cst_10 = arith.constant -1.000000e+30 : f32
    %24 = vector.broadcast %cst_10 : f32 to vector<16x128xf32>
    %25 = arith.select %23, %20, %24 : vector<16x128xi1>, vector<16x128xf32>
    %cst_11 = arith.constant dense<0xFF800000> : vector<16xf32>
    %26 = vector.multi_reduction <maximumf>, %25, %cst_11 [1] : vector<16x128xf32> to vector<16xf32>
    %27 = vector.shape_cast %26 : vector<16xf32> to vector<16x1xf32>
    %28 = vector.broadcast %27 : vector<16x1xf32> to vector<16x128xf32>
    %29 = arith.subf %25, %28 : vector<16x128xf32>
    %30 = math.exp %29 : vector<16x128xf32>
    %cst_12 = arith.constant dense<0.000000e+00> : vector<16xf32>
    %31 = vector.multi_reduction <add>, %30, %cst_12 [1] : vector<16x128xf32> to vector<16xf32>
    %32 = vector.shape_cast %31 : vector<16xf32> to vector<16x1xf32>
    %33 = tpu.reciprocal %32 {approx = true} : vector<16x1xf32> -> vector<16x1xf32>
    %34 = arith.mulf %32, %33 : vector<16x1xf32>
    %cst_13 = arith.constant 2.000000e+00 : f32
    %35 = vector.broadcast %cst_13 : f32 to vector<16x1xf32>
    %36 = arith.subf %35, %34 : vector<16x1xf32>
    %37 = arith.mulf %33, %36 : vector<16x1xf32>
    %38 = vector.broadcast %37 : vector<16x1xf32> to vector<16x128xf32>
    %39 = arith.mulf %30, %38 : vector<16x128xf32>
    %40 = arith.select %23, %39, %20 : vector<16x128xi1>, vector<16x128xf32>
    %c0_14 = arith.constant 0 : index
    %c0_15 = arith.constant 0 : index
    %41 = vector.load %arg3[%c0_14, %c0_15] : memref<16x128xf32, #tpu.memory_space<vmem>>, vector<16x128xf32>
    tpu.vector_store %arg3[%c0_14, %c0_15], %40 {strides = array<i32>} : memref<16x128xf32, #tpu.memory_space<vmem>>, vector<16x128xf32>,
    return
  }
  func.func @transform_0(%arg0: i32) -> (i32, i32) {
    %c0_i32 = arith.constant 0 : i32
    %c0_i32_0 = arith.constant 0 : i32
    return %arg0, %c0_i32 : i32, i32
  }
  func.func @transform_1(%arg0: i32) -> (i32, i32) {
    %c0_i32 = arith.constant 0 : i32
    %c0_i32_0 = arith.constant 0 : i32
    %c0_i32_1 = arith.constant 0 : i32
    return %c0_i32, %c0_i32_0 : i32, i32
  }
  func.func @transform_2(%arg0: i32) -> (i32, i32) {
    %c0_i32 = arith.constant 0 : i32
    %c0_i32_0 = arith.constant 0 : i32
    return %arg0, %c0_i32 : i32, i32
  }
}

</mosaic_0001>

<bundles_post_ra>
// kernel: actor_critic_forward.1
= control target key start
LH: loop header
LB: loop body
LE: loop exit
PB: predicated region body
PF: predicated region fallthrough
CT: control target
= control target key end

     0   :  { %7 = vsyncpa [#allocation3], 0  ;;  %s562_s9 = smov [#allocation2]   ;;  %s608_s0 = inlined_call_operand.vmem [shape: f32[16,8], index: 0, kind: input, shape index: {}]   ;;  %s609_s1 = inlined_call_operand.hbm [shape: f32[272,128], index: 1, kind: input, shape index: {}]   ;;  %s610_s2 = inlined_call_operand.vmem [shape: f32[16,128], index: 2, kind: output, shape index: {}]  }
   0x1   :  { %s15_s10 = sshll.u32 %s562_s9, 4  ;;  %s538_s13 = scalar_lea.hbm %s609_s1, 4352  ;;  %s16_s10 = int_to_ptr.vmem [resolvable:$true] %s15_s10 }
   0x2   :  { %p539_p0 = scmp.ne.s32.totalorder %s609_s1, %s538_s13  ;;  %p542_p1 = scmp.lt.u32.totalorder %s538_s13, %s609_s1 }
   0x4   :  { %p544_p2 = pnand %p542_p1, %p539_p0 }
   0x6   :  { %547 = shalt.err (!%p544_p2)
}
   0x7   :  { %s548_s18 = scalar_lea.vmem %s16_s10, 4352  ;;  %p553_p4 = scmp.lt.s32.totalorder %s16_s10, %s16_s10 }
   0x8   :  { %p549_p3 = scmp.ne.s32.totalorder %s16_s10, %s548_s18  ;;  %p554_p5 = scmp.lt.s32.totalorder %s548_s18, %s548_s18 }
   0xa   :  { %p555_p6 = por %p554_p5, %p553_p4 }
   0xc   :  { %p556_p7 = pnand %p555_p6, %p549_p3 }
   0xe   :  { %559 = shalt.err (!%p556_p7)
}
   0xf   :  { %s563_s19 = smov 128   ;;  %s564_s20 = smov 8  }
  0x10   :  { %21 = dma.hbm_to_vmem [thread:$0]  %s609_s1, 4352, %s16_s10, [#allocation3], %s563_s19, %s563_s19, %s564_s20  }
  0x11   :  { %560 = dma.done.wait [#allocation3], 4352  }
  0x12   :  { %561 = vsyncadd [#allocation3], 4294962944  ;;  %vm65_vm0 = vcmask 64512   ;;  %v27_v0 = vld [vmem:[#allocation2] sm:$0xff]  ;;  %v26_v2 = vld [vmem:[%s608_s0 + $0x8] sm:$0xff]  ;;  %v61_v48 = vlaneseq }
  0x13   :  { %v25_v1 = vld [vmem:[%s608_s0] sm:$0xff]  ;;  %388 = vmatprep.subr.mxu0 %v27_v0  ;;  %v29_v3 = vld [vmem:[#allocation2 + $0x10] sm:$0xff]  ;;  %v30_v4 = vld [vmem:[#allocation2 + $0x18] sm:$0xff] }
  0x14   :  { %390 = vmatprep.mubr.msk.f32.mxu0 %vm65_vm0, %v25_v1  ;;  %v31_v5 = vld [vmem:[#allocation2 + $0x20] sm:$0xff]  ;;  %389 = vmatpush3.msra.mxu0 %v27_v0  ;;  %v463_v6 = vpack.c.bf16 %v30_v4, %v29_v3  ;;  %v32_v7 = vld [vmem:[#allocation2 + $0x28] sm:$0xff]  ;;  %v33_v9 = vld [vmem:[#allocation2 + $0x30] sm:$0xff]  ;;  %v62_v49 = vshrl.u32 %v61_v48, 7 }
  0x15   :  { %391 = vmatmul.mubr.msk.f32.vlgmr.msra.gmra.mrb[0].mxu0 %vm65_vm0, %v26_v2  ;;  %v467_v8 = vpack.c.bf16 %v32_v7, %v31_v5  ;;  %v34_v10 = vld [vmem:[#allocation2 + $0x38] sm:$0xff]  ;;  %v35_v12 = vld [vmem:[#allocation2 + $0x40] sm:$0xff]  ;;  %v36_v13 = vld [vmem:[#allocation2 + $0x48] sm:$0xff]  ;;  %v310_v7 = vand.u32 127, %v61_v48 }
  0x16   :  { %464 = vmatprep.subr.bf16.mxu1 %v463_v6  ;;  %v471_v11 = vpack.c.bf16 %v34_v10, %v33_v9  ;;  %v475_v14 = vpack.c.bf16 %v36_v13, %v35_v12  ;;  %v37_v15 = vld [vmem:[#allocation2 + $0x50] sm:$0xff]  ;;  %v38_v16 = vld [vmem:[#allocation2 + $0x58] sm:$0xff]  ;;  %v39_v18 = vld [vmem:[#allocation2 + $0x60] sm:$0xff]  ;;  %v63_v50 = vsub.s32 0, %v62_v49  ;;  %v151_v62 = vsub.s32 1, %v62_v49 }
  0x17   :  { %466 = vmatpush3.bf16.msra.mxu1 %v463_v6  ;;  %v479_v17 = vpack.c.bf16 %v38_v16, %v37_v15  ;;  %v40_v19 = vld [vmem:[#allocation2 + $0x68] sm:$0xff]  ;;  %v41_v21 = vld [vmem:[#allocation2 + $0x70] sm:$0xff]  ;;  %v42_v22 = vld [vmem:[#allocation2 + $0x78] sm:$0xff]  ;;  %v232_v6 = vsub.s32 2, %v62_v49  ;;  %vm311_vm1 = vcmp.lt.s32.totalorder %v310_v7, 64 }
  0x18   :  { %468 = vmatprep.subr.bf16.mxu1 %v467_v8  ;;  %v483_v20 = vpack.c.bf16 %v40_v19, %v39_v18  ;;  %v487_v23 = vpack.c.bf16 %v42_v22, %v41_v21  ;;  %v43_v24 = vld [vmem:[#allocation2 + $0x80] sm:$0xff]  ;;  %v44_v25 = vld [vmem:[#allocation2 + $0x88] sm:$0xff]  ;;  %v45_v27 = vld [vmem:[#allocation2 + $0x90] sm:$0xff] }
  0x19   :  { %v491_v26 = vpack.c.bf16 %v44_v25, %v43_v24  ;;  %v46_v28 = vld [vmem:[#allocation2 + $0x98] sm:$0xff]  ;;  %v47_v29 = vld [vmem:[#allocation2 + $0xa0] sm:$0xff]  ;;  %v48_v31 = vld [vmem:[#allocation2 + $0xa8] sm:$0xff] }
  0x1a   :  { %v495_v30 = vpack.c.bf16 %v46_v28, %v45_v27  ;;  %v499_v32 = vpack.c.bf16 %v48_v31, %v47_v29  ;;  %v49_v33 = vld [vmem:[#allocation2 + $0xb0] sm:$0xff]  ;;  %v50_v34 = vld [vmem:[#allocation2 + $0xb8] sm:$0xff]  ;;  %v51_v36 = vld [vmem:[#allocation2 + $0xc0] sm:$0xff] }
  0x1b   :  { %470 = vmatpush3.bf16.msra.mxu1 %v467_v8  ;;  %v503_v35 = vpack.c.bf16 %v50_v34, %v49_v33  ;;  %v52_v37 = vld [vmem:[#allocation2 + $0xc8] sm:$0xff]  ;;  %v53_v39 = vld [vmem:[#allocation2 + $0xd0] sm:$0xff]  ;;  %v54_v40 = vld [vmem:[#allocation2 + $0xd8] sm:$0xff] }
  0x1c   :  { %472 = vmatprep.subr.bf16.mxu1 %v471_v11  ;;  %496 = vmatprep.subr.bf16.mxu0 %v495_v30  ;;  %v507_v38 = vpack.c.bf16 %v52_v37, %v51_v36  ;;  %v511_v41 = vpack.c.bf16 %v54_v40, %v53_v39  ;;  %v55_v42 = vld [vmem:[#allocation2 + $0xe0] sm:$0xff]  ;;  %v56_v43 = vld [vmem:[#allocation2 + $0xe8] sm:$0xff]  ;;  %v57_v45 = vld [vmem:[#allocation2 + $0xf0] sm:$0xff] }
  0x1d   :  { %498 = vmatpush3.bf16.msra.mxu0 %v495_v30  ;;  %v515_v44 = vpack.c.bf16 %v56_v43, %v55_v42  ;;  %v58_v46 = vld [vmem:[#allocation2 + $0xf8] sm:$0xff]  ;;  %v28_v51 = vld [vmem:[#allocation2 + $0x8] sm:$0xff]  ;;  %v59_v59 = vld [vmem:[#allocation2 + $0x100] sm:$0xff] }
  0x1e   :  { %500 = vmatprep.subr.bf16.mxu0 %v499_v32  ;;  %v519_v47 = vpack.c.bf16 %v58_v46, %v57_v45  ;;  %v64_v52 = vrot.slane %v28_v51, %v63_v50  ;;  %v60_v60 = vld [vmem:[#allocation2 + $0x108] sm:$0xff]  ;;  %v152_v63 = vrot.slane %v28_v51, %v151_v62  ;;  %v233_v8 = vrot.slane %v28_v51, %v232_v6 }
  0x1f   :  { %474 = vmatpush3.bf16.msra.mxu1 %v471_v11  ;;  %v523_v61 = vpack.c.bf16 %v60_v60, %v59_v59 }
  0x20   :  { %476 = vmatprep.subr.bf16.mxu1 %v475_v14 }
  0x21   :  { %502 = vmatpush3.bf16.msra.mxu0 %v499_v32 }
  0x22   :  { %504 = vmatprep.subr.bf16.mxu0 %v503_v35 }
  0x23   :  { %478 = vmatpush3.bf16.msra.mxu1 %v475_v14 }
  0x24   :  { %480 = vmatprep.subr.bf16.mxu1 %v479_v17 }
  0x25   :  { %506 = vmatpush3.bf16.msra.mxu0 %v503_v35 }
  0x26   :  { %508 = vmatprep.subr.bf16.mxu0 %v507_v38 }
  0x27   :  { %482 = vmatpush3.bf16.msra.mxu1 %v479_v17 }
  0x28   :  { %484 = vmatprep.subr.bf16.mxu1 %v483_v20 }
  0x29   :  { %510 = vmatpush3.bf16.msra.mxu0 %v507_v38 }
  0x2a   :  { %512 = vmatprep.subr.bf16.mxu0 %v511_v41 }
  0x2b   :  { %486 = vmatpush3.bf16.msra.mxu1 %v483_v20 }
  0x2c   :  { %488 = vmatprep.subr.bf16.mxu1 %v487_v23 }
  0x2d   :  { %514 = vmatpush3.bf16.msra.mxu0 %v511_v41 }
  0x2e   :  { %516 = vmatprep.subr.bf16.mxu0 %v515_v44 }
  0x2f   :  { %490 = vmatpush3.bf16.msra.mxu1 %v487_v23 }
  0x30   :  { %492 = vmatprep.subr.bf16.mxu1 %v491_v26 }
  0x31   :  { %518 = vmatpush3.bf16.msra.mxu0 %v515_v44 }
  0x32   :  { %520 = vmatprep.subr.bf16.mxu0 %v519_v47 }
  0x33   :  { %494 = vmatpush3.bf16.msra.mxu1 %v491_v26 }
  0x35   :  { %522 = vmatpush3.bf16.msra.mxu0 %v519_v47 }
  0x36   :  { %524 = vmatprep.subr.bf16.mxu0 %v523_v61 }
  0x39   :  { %526 = vmatpush3.bf16.msra.mxu0 %v523_v61 }
  0xe8   :  { %v392_v53 = vpop.f32.mrb[0].mxu0 }
  0xe9   :  { %v144_v54 = vadd.f32 %v392_v53, %v64_v52  ;;  %v138_v55 = vpop.f32.mrb[1].mxu0 }
  0xea   :  { %v139_v56 = vadd.f32 %v138_v55, %v64_v52 }
  0xeb   :  { %v148_v58 = vmax.f32 %v144_v54, 0.0 }
  0xec   :  { %v147_v57 = vmax.f32 %v139_v56, 0.0 }
  0xee   :  { %425 = vmatprep.mubr.f32.mxu1 %v147_v57 }
  0xef   :  { %426 = vmatmul.mubr.f32.vlgmr.msra.gmra.mrb[0].mxu1 %v148_v58 }
 0x1c2   :  { %v427_v0 = vpop.f32.mrb[0].mxu1 }
 0x1c3   :  { %v225_v1 = vadd.f32 %v427_v0, %v152_v63  ;;  %v219_v2 = vpop.f32.mrb[1].mxu1 }
 0x1c4   :  { %v220_v3 = vadd.f32 %v219_v2, %v152_v63 }
 0x1c5   :  { %v229_v5 = vmax.f32 %v225_v1, 0.0 }
 0x1c6   :  { %v228_v4 = vmax.f32 %v220_v3, 0.0 }
 0x1c8   :  { %460 = vmatprep.mubr.f32.mxu0 %v228_v4 }
 0x1c9   :  { %461 = vmatmul.mubr.f32.vlgmr.msra.gmra.mrb[2].mxu0 %v229_v5 }
 0x29c   :  { %v462_v9 = vpop.f32.mrb[2].mxu0 }
 0x29d   :  { %v300_v10 = vpop.f32.mrb[3].mxu0  ;;  %v306_v12 = vadd.f32 %v462_v9, %v233_v8 }
 0x29e   :  { %v301_v11 = vadd.f32 %v300_v10, %v233_v8 }
 0x29f   :  { %v313_v14 = vsel %vm311_vm1, %v306_v12, -1e+30 }
 0x2a0   :  { %v312_v13 = vsel %vm311_vm1, %v301_v11, -1e+30 }
 0x2a1   :  { %314 = vmax.xlane.f32.xlu0 %v312_v13 }
 0x2a5   :  { %316 = vmax.xlane.f32.xlu0 %v313_v14 }
 0x32e   :  { %v315_v15 = vpop.xlane.xlu0 %314 }
 0x32f   :  { %v318_v16 = vsub.f32 %v312_v13, %v315_v15 }
 0x331   :  { %v320_v17 = vmul.f32 1.442695, %v318_v16 }
 0x332   :  { %v317_v18 = vpop.xlane.xlu0 %316 }
 0x333   :  { %530 = vpow2.f32 %v320_v17  ;;  %v319_v19 = vsub.f32 %v313_v14, %v317_v18 }
 0x335   :  { %v322_v20 = vmul.f32 1.442695, %v319_v19 }
 0x337   :  { %532 = vpow2.f32 %v322_v20 }
 0x33d   :  { %v531_v21 = vpop.eup %530 }
 0x33e   :  { %324 = vadd.xlane.f32.xlu1 %v531_v21 }
 0x341   :  { %v533_v22 = vpop.eup %532 }
 0x342   :  { %326 = vadd.xlane.f32.xlu1 %v533_v22 }
 0x3cb   :  { %v325_v23 = vpop.xlane.xlu1 %324 }
 0x3cc   :  { %534 = vrcp.f32 %v325_v23 }
 0x3cf   :  { %v327_v24 = vpop.xlane.xlu1 %326 }
 0x3d0   :  { %536 = vrcp.f32 %v327_v24 }
 0x3d6   :  { %v535_v25 = vpop.eup %534 }
 0x3d7   :  { %v330_v26 = vmul.f32 %v535_v25, %v325_v23 }
 0x3d9   :  { %v332_v27 = vsub.f32 2.0, %v330_v26 }
 0x3da   :  { %v537_v28 = vpop.eup %536 }
 0x3db   :  { %v334_v29 = vmul.f32 %v535_v25, %v332_v27  ;;  %v331_v30 = vmul.f32 %v537_v28, %v327_v24 }
 0x3dd   :  { %v336_v31 = vmul.f32 %v531_v21, %v334_v29  ;;  %v333_v32 = vsub.f32 2.0, %v331_v30 }
 0x3df   :  { %v338_v33 = vsel %vm311_vm1, %v336_v31, %v301_v11  ;;  %v335_v34 = vmul.f32 %v537_v28, %v333_v32 }
 0x3e0   :  { %340 = vst [vmem:[%s610_s2] sm:$0xff] %v338_v33 }
 0x3e1   :  { %v337_v35 = vmul.f32 %v533_v22, %v335_v34 }
 0x3e3   :  { %v339_v36 = vsel %vm311_vm1, %v337_v35, %v306_v12 }
 0x3e4   :  { %341 = vst [vmem:[%s610_s2 + $0x8] sm:$0xff] %v339_v36 }
 0x3e5   :  { %346 = vsyncpa [#allocation3], 1 }

</bundles_post_ra>
